<compile_context>
chip_gen: v7x
topology: tpu7x:2x2x1
jax: 0.10.0
libtpu: 0.0.40
codegen_flags: <defaults>
</compile_context>

<pallas_src>
import functools
import math

import jax
import jax.numpy as jnp
from jax.experimental import pallas as pl
from jax.experimental.pallas import tpu as pltpu

_LANE = 128      # vreg lane width (last dim)
_SUBLANE = 8     # vreg sublane width (second-last dim)


def _round_up(x, m):
    return ((x + m - 1) // m) * m


def _mlp_layer_kernel(x_ref, w_ref, b_ref, o_ref, h_ref):
    """One grid step == one Linear layer.

    x_ref : (Bp, Dp)  bf16  padded input   (consumed only at layer 0)
    w_ref : (Dp, Dp)  bf16  this layer's weight (pipelined over the layer grid)
    b_ref : (1, Dp)   bf16  this layer's bias
    o_ref : (Bp, Dp)  f32   padded output  (written only at the last layer)
    h_ref : (Bp, Dp)  bf16  VMEM-resident running activation (persists across steps)
    """
    layer = pl.program_id(0)
    last = pl.num_programs(0) - 1

    @pl.when(layer == 0)
    def _():
        h_ref[...] = x_ref[...]

    # MXU bf16 matmul with f32 accumulation, VPU bias add.
    y = jnp.dot(h_ref[...], w_ref[...], preferred_element_type=jnp.float32)
    y = y + b_ref[...].astype(jnp.float32)

    @pl.when(layer < last)
    def _():
        h_ref[...] = jnp.maximum(y, 0.0).astype(h_ref.dtype)   # ReLU between layers

    @pl.when(layer == last)
    def _():
        o_ref[...] = y.astype(o_ref.dtype)                      # final Linear, no ReLU


def pack_mlp_params(params, weight_dtype=jnp.bfloat16):
    """One-time parameter prep: pad every layer to a common (Dp, Dp) and stack.

    params: list of (w[in, out], b[out]).
    Returns (w_stack[L, Dp, Dp], b_stack[L, 1, Dp], in_features, out_features, Dp).
    """
    in_features = params[0][0].shape[0]
    dims = [in_features] + [w.shape[1] for (w, _) in params]
    out_features = dims[-1]
    Dp = _round_up(max(dims), _LANE)

    w_stack = jnp.stack([
        jnp.pad(w.astype(weight_dtype),
                ((0, Dp - w.shape[0]), (0, Dp - w.shape[1])))
        for (w, _) in params])
    b_stack = jnp.stack([
        jnp.pad(b.astype(weight_dtype), (0, Dp - b.shape[0]))[None, :]
        for (_, b) in params])
    return w_stack, b_stack, in_features, out_features, Dp


def fused_mlp(x, packed):
    """Whole-MLP forward in one pallas_call with a per-layer grid."""
    w_stack, b_stack, in_features, out_features, Dp = packed
    n_layers = w_stack.shape[0]
    B = x.shape[0]
    Bp = _round_up(max(B, _SUBLANE), _SUBLANE)

    x_pad = jnp.pad(x.astype(jnp.bfloat16),
                    ((0, Bp - B), (0, Dp - in_features)))

    flops = 2 * n_layers * Bp * Dp * Dp
    bytes_accessed = (2 * Bp * Dp                          # x in (bf16)
                      + 2 * n_layers * (Dp * Dp + Dp)      # weights + biases (bf16)
                      + 4 * Bp * Dp)                       # output (f32)

    out_pad = pl.pallas_call(
        _mlp_layer_kernel,
        out_shape=jax.ShapeDtypeStruct((Bp, Dp), jnp.float32),
        grid_spec=pltpu.PrefetchScalarGridSpec(
            num_scalar_prefetch=0,
            grid=(n_layers,),
            in_specs=[
                pl.BlockSpec((Bp, Dp), lambda l: (0, 0)),          # x (resident)
                pl.BlockSpec((None, Dp, Dp), lambda l: (l, 0, 0)),  # W_l (pipelined)
                pl.BlockSpec((None, 1, Dp), lambda l: (l, 0, 0)),   # b_l (pipelined)
            ],
            out_specs=pl.BlockSpec((Bp, Dp), lambda l: (0, 0)),     # resident, write at end
            scratch_shapes=[pltpu.VMEM((Bp, Dp), jnp.bfloat16)],    # running activation
        ),
        compiler_params=pltpu.CompilerParams(
            dimension_semantics=("arbitrary",)),                    # layers are sequential
        cost_estimate=pl.CostEstimate(
            flops=flops, transcendentals=0, bytes_accessed=bytes_accessed),
    )(x_pad, w_stack, b_stack)

    return out_pad[:B, :out_features].astype(x.dtype)


def init_mlp_params(key, in_features, h_dim, n_layers, out_features):
    """Deterministic init mirroring nn.Linear default (uniform +-1/sqrt(fan_in)).

    Weights returned already transposed to [in, out]."""
    dims = [in_features] + [h_dim] * (n_layers - 1) + [out_features]
    params = []
    for i in range(len(dims) - 1):
        fan_in, fan_out = dims[i], dims[i + 1]
        key, kw, kb = jax.random.split(key, 3)
        bound = 1.0 / math.sqrt(float(fan_in))
        w = jax.random.uniform(kw, (fan_in, fan_out), jnp.float32, -bound, bound)
        b = jax.random.uniform(kb, (fan_out,), jnp.float32, -bound, bound)
        params.append((w, b))
    return params


def mlp_forward(x, packed):
    """Matches MLP.forward: relu after every layer except the last (dropout=0)."""
    return fused_mlp(x, packed)


if __name__ == "__main__":
    key = jax.random.PRNGKey(0)
    in_features, h_dim, n_layers, out_features = 16, 32, 3, 8
    batch = 8

    kx, kp = jax.random.split(key)
    x = jax.random.normal(kx, (batch, in_features), jnp.float32)
    params = init_mlp_params(kp, in_features, h_dim, n_layers, out_features)

    packed = pack_mlp_params(params)          # one-time pad + stack (bf16)
    out = mlp_forward(x, packed)
    out = jax.block_until_ready(out)

    # Pure-JAX f32 reference of the same math (kernel uses bf16 weights/acts
    # with f32 accumulation, so tolerance is relaxed accordingly).
    ref = x
    for (w, b) in params[:-1]:
        ref = jnp.maximum(ref @ w + b, 0.0)
    ref = ref @ params[-1][0] + params[-1][1]

    assert out.shape == (batch, out_features)
    assert jnp.allclose(out, ref, atol=5e-2, rtol=5e-2), (
        float(jnp.max(jnp.abs(out - ref))))

    print("KERNEL_OK")
</pallas_src>

<mosaic_0001>
module attributes {stable_mosaic.version = 11 : i64} {
  func.func @_mlp_layer_kernel(%arg0: i32, %arg1: memref<8x128xbf16, #tpu.memory_space<vmem>>, %arg2: memref<1x128x128xbf16, #tpu.memory_space<vmem>>, %arg3: memref<1x1x128xbf16, #tpu.memory_space<vmem>>, %arg4: memref<8x128xf32, #tpu.memory_space<vmem>>, %arg5: memref<8x128xbf16, #tpu.memory_space<vmem>>) attributes {dimension_semantics = [#tpu.dimension_semantics<arbitrary>], iteration_bounds = array<i64: 3>, scalar_prefetch = 0 : i64, scratch_operands = 1 : i64, tpu.core_type = #tpu.core_type<tc>, window_params = [{pipeline_mode = #tpu.pipeline_mode<synchronous>, transform_indices = @transform_0, window_bounds = array<i64: 8, 128>}, {transform_indices = @transform_1, window_bounds = array<i64: 1, 128, 128>}, {transform_indices = @transform_2, window_bounds = array<i64: 1, 1, 128>}, {pipeline_mode = #tpu.pipeline_mode<synchronous>, transform_indices = @transform_3, window_bounds = array<i64: 8, 128>}]} {
    %c0_i32 = arith.constant 0 : i32
    %0 = arith.cmpi eq, %arg0, %c0_i32 : i32
    %1 = arith.extui %0 : i1 to i32
    %c0_i32_0 = arith.constant 0 : i32
    %2 = arith.cmpi ne, %1, %c0_i32_0 : i32
    scf.if %2 {
      %c0_11 = arith.constant 0 : index
      %c0_12 = arith.constant 0 : index
      %18 = vector.load %arg1[%c0_11, %c0_12] : memref<8x128xbf16, #tpu.memory_space<vmem>>, vector<8x128xbf16>
      %c0_13 = arith.constant 0 : index
      %c0_14 = arith.constant 0 : index
      %19 = vector.load %arg5[%c0_13, %c0_14] : memref<8x128xbf16, #tpu.memory_space<vmem>>, vector<8x128xbf16>
      tpu.vector_store %arg5[%c0_13, %c0_14], %18 {strides = array<i32>} : memref<8x128xbf16, #tpu.memory_space<vmem>>, vector<8x128xbf16>,
    } else {
    }
    %c0 = arith.constant 0 : index
    %c0_1 = arith.constant 0 : index
    %3 = vector.load %arg5[%c0, %c0_1] : memref<8x128xbf16, #tpu.memory_space<vmem>>, vector<8x128xbf16>
    %c0_2 = arith.constant 0 : index
    %c0_3 = arith.constant 0 : index
    %c0_4 = arith.constant 0 : index
    %4 = vector.load %arg2[%c0_2, %c0_3, %c0_4] : memref<1x128x128xbf16, #tpu.memory_space<vmem>>, vector<1x128x128xbf16>
    %5 = vector.shape_cast %4 : vector<1x128x128xbf16> to vector<128x128xbf16>
    %cst = arith.constant dense<0.000000e+00> : vector<8x128xf32>
    %6 = tpu.matmul %3, %5, %cst {dimension_numbers = #tpu.dot_dimension_numbers<[1], [0], [0], [1], [0, 0, 1, 1], [], []>} : vector<8x128xbf16>, vector<128x128xbf16>, vector<8x128xf32> -> vector<8x128xf32>
    %c0_5 = arith.constant 0 : index
    %c0_6 = arith.constant 0 : index
    %c0_7 = arith.constant 0 : index
    %7 = vector.load %arg3[%c0_5, %c0_6, %c0_7] : memref<1x1x128xbf16, #tpu.memory_space<vmem>>, vector<1x1x128xbf16>
    %8 = vector.shape_cast %7 : vector<1x1x128xbf16> to vector<1x128xbf16>
    %9 = arith.extf %8 : vector<1x128xbf16> to vector<1x128xf32>
    %10 = vector.broadcast %9 : vector<1x128xf32> to vector<8x128xf32>
    %11 = arith.addf %6, %10 : vector<8x128xf32>
    %c2_i32 = arith.constant 2 : i32
    %12 = arith.cmpi slt, %arg0, %c2_i32 : i32
    %13 = arith.extui %12 : i1 to i32
    %c0_i32_8 = arith.constant 0 : i32
    %14 = arith.cmpi ne, %13, %c0_i32_8 : i32
    scf.if %14 {
      %cst_11 = arith.constant 0.000000e+00 : f32
      %18 = vector.broadcast %cst_11 : f32 to vector<8x128xf32>
      %19 = arith.maximumf %11, %18 : vector<8x128xf32>
      %20 = arith.truncf %19 : vector<8x128xf32> to vector<8x128xbf16>
      %c0_12 = arith.constant 0 : index
      %c0_13 = arith.constant 0 : index
      %21 = vector.load %arg5[%c0_12, %c0_13] : memref<8x128xbf16, #tpu.memory_space<vmem>>, vector<8x128xbf16>
      tpu.vector_store %arg5[%c0_12, %c0_13], %20 {strides = array<i32>} : memref<8x128xbf16, #tpu.memory_space<vmem>>, vector<8x128xbf16>,
    } else {
    }
    %c2_i32_9 = arith.constant 2 : i32
    %15 = arith.cmpi eq, %arg0, %c2_i32_9 : i32
    %16 = arith.extui %15 : i1 to i32
    %c0_i32_10 = arith.constant 0 : i32
    %17 = arith.cmpi ne, %16, %c0_i32_10 : i32
    scf.if %17 {
      %c0_11 = arith.constant 0 : index
      %c0_12 = arith.constant 0 : index
      %18 = vector.load %arg4[%c0_11, %c0_12] : memref<8x128xf32, #tpu.memory_space<vmem>>, vector<8x128xf32>
      tpu.vector_store %arg4[%c0_11, %c0_12], %11 {strides = array<i32>} : memref<8x128xf32, #tpu.memory_space<vmem>>, vector<8x128xf32>,
    } else {
    }
    return
  }
  func.func @transform_0(%arg0: i32) -> (i32, i32) {
    %c0_i32 = arith.constant 0 : i32
    %c0_i32_0 = arith.constant 0 : i32
    %c0_i32_1 = arith.constant 0 : i32
    return %c0_i32, %c0_i32_0 : i32, i32
  }
  func.func @transform_1(%arg0: i32) -> (i32, i32, i32) {
    %c0_i32 = arith.constant 0 : i32
    %c0_i32_0 = arith.constant 0 : i32
    %c0_i32_1 = arith.constant 0 : i32
    return %arg0, %c0_i32, %c0_i32_0 : i32, i32, i32
  }
  func.func @transform_2(%arg0: i32) -> (i32, i32, i32) {
    %c0_i32 = arith.constant 0 : i32
    %c0_i32_0 = arith.constant 0 : i32
    %c0_i32_1 = arith.constant 0 : i32
    return %arg0, %c0_i32, %c0_i32_0 : i32, i32, i32
  }
  func.func @transform_3(%arg0: i32) -> (i32, i32) {
    %c0_i32 = arith.constant 0 : i32
    %c0_i32_0 = arith.constant 0 : i32
    %c0_i32_1 = arith.constant 0 : i32
    return %c0_i32, %c0_i32_0 : i32, i32
  }
}

</mosaic_0001>

<bundles_post_ra>
// kernel: tpu_custom_call.1
= control target key start
LH: loop header
LB: loop body
LE: loop exit
PB: predicated region body
PF: predicated region fallthrough
CT: control target
= control target key end

     0   :  { %8 = vsyncpa [#allocation4], 0  ;;  %s775_s0 = inlined_call_operand.vmem [shape: bf16[8,128], index: 0, kind: input, shape index: {}]   ;;  %s776_s1 = inlined_call_operand.hbm [shape: bf16[3,128,128], index: 1, kind: input, shape index: {}]   ;;  %s777_s2 = inlined_call_operand.vmem [shape: bf16[3,1,128], index: 2, kind: input, shape index: {}]   ;;  %s778_s3 = inlined_call_operand.hbm [shape: f32[8,128], index: 3, kind: output, shape index: {}]  }
   0x1   :  { %10 = vsyncpa [#allocation4 + $0x1], 0 }
   0x2   :  { %11 = vsyncpa [#allocation5], 0  ;;  %s620_s12 = smov 0   ;;  %s622_s13 = smov 0  }
   0x3   :  { %s624_s14 = smov 0   ;;  %s626_s15 = smov 0  }
   0x4 LB: > { %s639_s16 = sadd.s32 4294967295, %s592_s15   ;;  %s642_s17 = sadd.s32 1, %s592_s15   ;;  %s592_s15 = sphi %s626_s15, %s785_s15   ;;  %s588_s14 = sphi %s624_s14, %s784_s14   ;;  %s584_s13 = sphi %s622_s13, %s783_s13   ;;  %s580_s12 = sphi %s620_s12, %s782_s12  }
   0x5   : > { %s42_s18 = ssub.s32 %s592_s15, %s642_s17  ;;  %s45_s19 = sadd.s32 1, %s588_s14 }
   0x6   : > { %p43_p0 = scmp.eq.s32.totalorder %s42_s18, 0  ;;  %p52_p1 = scmp.ne.s32.totalorder %s588_s14, %s584_s13 }
   0x7   : > { %p53_p2 = scmp.eq.s32.totalorder %s592_s15, 0  ;;  %p58_p3 = scmp.ne.s32.totalorder %s584_s13, %s580_s12 }
   0x8   : > { %s652_s20 = scalar_select %p43_p0, %s588_s14, %s45_s19  }
   0x9   : > { %p54_p4 = por %p53_p2, %p52_p1  ;;  %p59_p5 = scmp.eq.s32.totalorder %s639_s16, 0 }
   0xa   : > { %p450_p6 = scmp.lt.s32.totalorder %s592_s15, 3  ;;  %s132_s22 = sand.u32 1, %s588_s14  }
   0xb   : > { %p656_p7 = por %p59_p5, %p58_p3  ;;  %s390_s23 = sshll.u32 %s132_s22, 6 }
   0xc   : > { %s410_s24 = sshll.u32 %s592_s15, 10  ;;  %s136_s28 = scalar_lea.vmem [#allocation3], %s390_s23 }
   0xd   : > { %s665_s27 = scalar_lea.hbm %s776_s1, %s410_s24  ;;  %s143_s29 = sshll.u32 %s136_s28, 4  ;;  %s667_s29 = int_to_ptr.vmem [resolvable:$true] %s143_s29 }
   0xe   : > { %p669_p8 = pnand %p450_p6, %p54_p4  ;;  %s674_s4 = scalar_lea.sflag [#allocation4], %s132_s22 }
   0xf   : > { %s498_s5 = scalar_lea.hbm %s665_s27, 1024  ;;  %s503_s8 = scalar_lea.hbm %s776_s1, 3072 }
  0x10   : > { %p499_p10 = scmp.ne.s32.totalorder %s665_s27, %s498_s5  ;;  %p500_p11 = pneg %p669_p8 }
  0x11   : > { %p504_p0 = scmp.lt.u32.totalorder %s665_s27, %s776_s1  ;;  %p505_p1 = scmp.lt.u32.totalorder %s503_s8, %s498_s5 }
  0x12   : > { %p501_p12 = pnand %p500_p11, %p499_p10  ;;  %p507_p3 = scmp.lt.u32.totalorder %s498_s5, %s665_s27 }
  0x13   : > { %p506_p2 = por %p505_p1, %p504_p0 }
  0x14   : > { %p502_p13 = pneg %p501_p12 }
  0x15   : > { %p508_p4 = por %p507_p3, %p506_p2 }
  0x17   : > { %p509_p5 = pnand %p508_p4, %p502_p13 }
  0x19   : > { %512 = shalt.err (!%p509_p5)
}
  0x1a   : > { %s513_s11 = scalar_lea.vmem %s667_s29, 1024  ;;  %s594_s12 = smov [#allocation3]  }
  0x1b   : > { %p514_p6 = scmp.ne.s32.totalorder %s667_s29, %s513_s11  ;;  %s518_s18 = sshll.u32 %s594_s12, 4  ;;  %s519_s18 = int_to_ptr.vmem [resolvable:$false] %s518_s18 }
  0x1c   : > { %s520_s19 = scalar_lea.vmem %s519_s18, 2048  ;;  %p521_p9 = scmp.lt.s32.totalorder %s667_s29, %s519_s18 }
  0x1d   : > { %p516_p10 = pnand %p514_p6, %p500_p11  ;;  %p522_p0 = scmp.lt.s32.totalorder %s520_s19, %s513_s11 }
  0x1f   : > { %p517_p12 = pneg %p516_p10  ;;  %p523_p1 = por %p522_p0, %p521_p9 }
  0x21   : > { %p524_p2 = pnand %p523_p1, %p517_p12 }
  0x23   : > { %527 = shalt.err (!%p524_p2)
}
  0x24   : > { %s595_s22 = smov 64   ;;  %s596_s23 = smov 4  }
  0x25   : > { %449 = dma.hbm_to_vmem [thread:$0]  (!%p669_p8), %s665_s27, 1024, %s667_s29, %s674_s4, %s595_s22, %s595_s22, %s596_s23  }
  0x26   : > { %p157_p11 = scmp.lt.s32.totalorder %s592_s15, 4  ;;  %p781_p13 = scmp.ge.s32.totalorder %s592_s15, 1 }
  0x28   : > { %p158_p3 = pnand %p781_p13, %p157_p11 }
  0x29   : > { %s163_s24 = sand.u32 (!%p158_p3), 1, %s584_s13  }
  0x2a   : > { %161 = sbr.rel (%p158_p3) target bundleno = 346 (0x15a), region = 32  ;;  %s394_s25 = sshll.u32 (!%p158_p3), %s163_s24, 6 }
  0x2b   : > { %s164_s26 = scalar_lea.sflag (!%p158_p3), [#allocation4], %s163_s24  ;;  %s706_s28 = scalar_lea.vmem (!%p158_p3), [#allocation3], %s394_s25 }
  0x31   : > { %571 = dma.done.wait (%p656_p7), %s164_s26, 1024  }
  0x32   : > { %573 = vsyncadd (%p656_p7), %s164_s26, 4294966272  ;;  %p188_p9 = scmp.lt.s32.totalorder %s639_s16, 2  ;;  %p395_p8 = scmp.ne.s32.totalorder %s639_s16, 0 }
  0x33   : > { %v196_v0 = vld [vmem:[%s775_s0] sm:$0xf] (!%p395_p8) }
  0x34   : > { %s714_s27 = scalar_select %p188_p9, %s639_s16, 2 }
  0x35   : > { %195 = sbr.rel (%p395_p8) target bundleno = 60 (0x3c), region = 40  ;;  %197 = vst [vmem:[#allocation2] sm:$0xf] (!%p395_p8), %v196_v0 }
  0x36   : > { %s190_s30 = scalar_lea.vmem %s777_s2, %s714_s27 }
  0x3c PF: > { %v490_v1 = vld [vmem:[%s706_s28] sm:$0xff]   ;;  %v597_v2 = vmov 0.0   ;;  %v491_v3 = vld [vmem:[%s706_s28 + $0x8] sm:$0xff]   ;;  %vm598_vm0 = vmmov 0   ;;  %v492_v4 = vld [vmem:[%s706_s28 + $0x10] sm:$0xff]   ;;  %v217_v11 = vlaneseq  ;;  %p404_p7 = scmp.ge.s32.totalorder %s639_s16, 2 }
  0x3d   : > { %420 = vmatprep.subr.bf16.mxu0 %v597_v2  ;;  %436 = vmatprep.mubr.msk.bf16.mxu0 %vm598_vm0, %v597_v2  ;;  %v493_v5 = vld [vmem:[%s706_s28 + $0x18] sm:$0xff]   ;;  %v494_v6 = vld [vmem:[%s706_s28 + $0x20] sm:$0xff]   ;;  %v495_v7 = vld [vmem:[%s706_s28 + $0x28] sm:$0xff]  }
  0x3e   : > { %421 = vmatpush3.bf16.msra.mxu0 %v490_v1  ;;  %v496_v8 = vld [vmem:[%s706_s28 + $0x30] sm:$0xff]   ;;  %v497_v9 = vld [vmem:[%s706_s28 + $0x38] sm:$0xff]   ;;  %v218_v12 = vshrl.u32 %v217_v11, 7 }
  0x3f   : > { %422 = vmatprep.subr.bf16.mxu0 %v597_v2  ;;  %v198_v10 = vld [vmem:[#allocation2] sm:$0xf] }
  0x40   : > { %v215_v13 = vld [vmem:[%s190_s30] sm:$0x1]  ;;  %v219_v15 = vsub.s32 0, %v218_v12 }
  0x41   : > { %v216_v14 = vunpack.c.l.bf16 %v215_v13 }
  0x42   : > { %423 = vmatpush3.bf16.msra.mxu0 %v491_v3 }
  0x43   : > { %424 = vmatprep.subr.bf16.mxu0 %v597_v2  ;;  %v220_v16 = vrot.slane %v216_v14, %v219_v15 }
  0x46   : > { %425 = vmatpush3.bf16.msra.mxu0 %v492_v4 }
  0x47   : > { %426 = vmatprep.subr.bf16.mxu0 %v597_v2 }
  0x4a   : > { %427 = vmatpush3.bf16.msra.mxu0 %v493_v5 }
  0x4b   : > { %428 = vmatprep.subr.bf16.mxu0 %v597_v2 }
  0x4e   : > { %429 = vmatpush3.bf16.msra.mxu0 %v494_v6 }
  0x4f   : > { %430 = vmatprep.subr.bf16.mxu0 %v597_v2 }
  0x52   : > { %431 = vmatpush3.bf16.msra.mxu0 %v495_v7 }
  0x53   : > { %432 = vmatprep.subr.bf16.mxu0 %v597_v2 }
  0x56   : > { %433 = vmatpush3.bf16.msra.mxu0 %v496_v8 }
  0x57   : > { %434 = vmatprep.subr.bf16.mxu0 %v597_v2 }
  0x5a   : > { %435 = vmatpush3.bf16.msra.mxu0 %v497_v9 }
  0x5d   : > { %437 = vmatmul.mubr.bf16.vlgmr.msra.gmra.mrb[0].mxu0 %v198_v10 }
 0x12d   : > { %312 = sbr.rel (%p404_p7) target bundleno = 312 (0x138), region = 44 }
 0x130   : > { %v303_v17 = vpop.f32.mrb[0].mxu0 }
 0x131   : > { %v304_v18 = vadd.f32 %v303_v17, %v220_v16  ;;  %v438_v19 = vpop.f32.mrb[1].mxu0 }
 0x132   : > { %v306_v20 = vpop.f32.mrb[2].mxu0 }
 0x133   : > { %v439_v21 = vpop.f32.mrb[3].mxu0  ;;  %v313_v22 = vmax.f32 (!%p404_p7), %v304_v18, 0.0 }
 0x135   : > { %v314_v23 = vpack.c.bf16 %v313_v22, %v313_v22 }
 0x137   : > { %315 = vst [vmem:[#allocation2] sm:$0xf] %v314_v23 }
 0x138 PF: > { %p405_p4 = scmp.ne.s32.totalorder %s639_s16, 2 }
 0x139   : > { %320 = vst [vmem:[#allocation6] sm:$0xff] (!%p405_p4), %v304_v18 }
 0x13a   : > { %319 = sbr.rel (%p405_p4) target bundleno = 321 (0x141), region = 48 }
 0x141 PF: > { %p451_p5 = scmp.eq.s32.totalorder %s639_s16, 2  ;;  %s599_s7 = smov [#allocation6]  }
 0x142   : > { %s328_s8 = sshll.u32 %s599_s7, 4  ;;  %s329_s8 = int_to_ptr.vmem [resolvable:$true] %s328_s8 }
 0x143   : > { %s528_s9 = scalar_lea.vmem %s329_s8, 128  ;;  %p535_p0 = scmp.lt.s32.totalorder %s329_s8, %s329_s8 }
 0x144   : > { %p529_p6 = scmp.ne.s32.totalorder %s329_s8, %s528_s9  ;;  %p536_p1 = scmp.lt.s32.totalorder %s528_s9, %s528_s9 }
 0x146   : > { %p530_p10 = pnand %p529_p6, %p451_p5  ;;  %p537_p2 = por %p536_p1, %p535_p0 }
 0x148   : > { %p531_p12 = pneg %p530_p10 }
 0x14a   : > { %p538_p11 = pnand %p537_p2, %p531_p12 }
 0x14c   : > { %541 = shalt.err (!%p538_p11)
}
 0x14d   : > { %s542_s12 = scalar_lea.hbm %s778_s3, 128 }
 0x14e   : > { %p543_p13 = scmp.ne.s32.totalorder %s778_s3, %s542_s12  ;;  %p548_p8 = scmp.lt.u32.totalorder %s542_s12, %s778_s3 }
 0x150   : > { %p544_p3 = pnand %p543_p13, %p451_p5 }
 0x152   : > { %p545_p9 = pneg %p544_p3 }
 0x154   : > { %p550_p7 = pnand %p548_p8, %p545_p9 }
 0x156   : > { %553 = shalt.err (!%p550_p7)
}
 0x157   : > { %443 = dma.vmem_to_hbm [thread:$0]  (%p451_p5), %s329_s8, 128, %s778_s3, [#allocation5]  }
 0x158   : > { %575 = dma.done.wait (%p451_p5), [#allocation5], 128  }
 0x159   : > { %577 = vsyncadd (%p451_p5), [#allocation5], 4294967168 }
 0x15a PF: > { %p14_p4 = scmp.ge.s32.totalorder %s642_s17, 5   ;;  %s782_s12 = smov %s584_s13 }
 0x15b   : > { %s783_s13 = smov %s588_s14  ;;  %s784_s14 = smov %s652_s20 }
 0x15c   : > { %s785_s15 = smov %s642_s17  ;;  %16 = sbr.rel (!%p14_p4) target bundleno = 4 (0x4), region = 84 }
 0x163   :  { %341 = vsyncpa [#allocation4], 1 }
 0x164   :  { %343 = vsyncpa [#allocation4 + $0x1], 1 }
 0x165   :  { %344 = vsyncpa [#allocation5], 1 }
 0x166   :  { %346 = vsyncpa [#allocation5 + $0x1], 1 }

</bundles_post_ra>
